<compile_context>
chip_gen: v7x
topology: tpu7x:2x2x1
jax: 0.10.0
libtpu: 0.0.40
codegen_flags: <defaults>
</compile_context>

<pallas_src>
import functools

import jax
import jax.numpy as jnp
from jax.experimental import pallas as pl
from jax.experimental.pallas import tpu as pltpu


def _round_up(n, m):
    return ((n + m - 1) // m) * m


# ----------------------------------------------------------------------------
# Pallas kernel: fused-concat MLP
#   refs = (*input_parts, *w0_parts, b0, w1, b1, ..., wL, bL, out_ref)
#   n_parts / n_layers / final_vpu are static (bound via functools.partial).
# ----------------------------------------------------------------------------
def _mlp_kernel(*refs, n_parts, n_layers, final_vpu):
    parts = refs[:n_parts]
    w0s = refs[n_parts:2 * n_parts]
    rest = refs[2 * n_parts:]
    b0_ref = rest[0]
    layer_refs = rest[1:-1]          # (w, b) pairs for layers 1 .. n_layers-1
    out_ref = rest[-1]

    # Layer 0: fused concat as partial matmuls (bf16 operands, f32 accumulation).
    h = jnp.dot(parts[0][...], w0s[0][...], preferred_element_type=jnp.float32)
    for p_ref, w_ref in zip(parts[1:], w0s[1:]):
        h = h + jnp.dot(p_ref[...], w_ref[...],
                        preferred_element_type=jnp.float32)
    h = jnp.maximum(h + b0_ref[...], 0.0)        # bias + ReLU in f32 (VPU)
    # Dropout(input_dropout) -> identity at inference.

    for li in range(1, n_layers):
        w_ref = layer_refs[2 * (li - 1)]
        b_ref = layer_refs[2 * (li - 1) + 1]
        is_last = li == n_layers - 1
        if is_last and final_vpu:
            # Degenerate N=1 output: VPU multiply + lane reduction (XLU), keep f32.
            w_row = w_ref[...].astype(jnp.float32)        # (1, K) row layout
            h = jnp.sum(h * w_row, axis=-1, keepdims=True) + b_ref[...]
        else:
            h = jnp.dot(h.astype(w_ref.dtype), w_ref[...],
                        preferred_element_type=jnp.float32) + b_ref[...]
            if not is_last:
                h = jnp.maximum(h, 0.0)
                # Dropout(dropout) -> identity at inference.
    out_ref[...] = h.astype(out_ref.dtype)


# ----------------------------------------------------------------------------
# Wrapper: batch-tiled pallas_call with VMEM-resident weights
# ----------------------------------------------------------------------------
def te_predictor_mlp(parts, linears, *, block_batch=256, out_dtype=jnp.float32):
    """parts: list of [B, d_i] arrays; linears: list of (w [in,out], b [1,out])."""
    n_parts = len(parts)
    n_layers = len(linears)
    B = parts[0].shape[0]
    w0, b0 = linears[0]
    part_dims = [p.shape[1] for p in parts]
    assert sum(part_dims) == w0.shape[0], "layer-0 weight rows != concat width"
    out_dim = linears[-1][0].shape[1]
    final_vpu = (out_dim == 1) and (n_layers >= 2)

    compute_dtype = jnp.bfloat16

    # Batch tile: fill MXU rows (256 on v6e/v7x), pad batch to a tile multiple.
    tb = min(block_batch, _round_up(max(B, 1), 8))
    padded_b = _round_up(B, tb)

    parts_c = []
    for p in parts:
        p = p.astype(compute_dtype)
        if padded_b != B:
            p = jnp.pad(p, ((0, padded_b - B), (0, 0)))
        parts_c.append(p)

    # Split layer-0 weight into row slabs matching the concat layout (fused concat).
    w0_parts, off = [], 0
    for d in part_dims:
        w0_parts.append(w0[off:off + d, :].astype(compute_dtype))
        off += d

    layer_ops = []
    for li in range(1, n_layers):
        w, b = linears[li]
        if li == n_layers - 1 and final_vpu:
            w = w.T                                   # (1, K) lane-dense row
        layer_ops += [w.astype(compute_dtype), b.astype(jnp.float32)]

    inputs = (*parts_c, *w0_parts, b0.astype(jnp.float32), *layer_ops)

    def batch_spec(shape):
        return pl.BlockSpec((tb, shape[1]), lambda i: (i, 0))

    def resident_spec(shape):
        return pl.BlockSpec(shape, lambda i: (0, 0))

    in_specs = (
        [batch_spec(p.shape) for p in parts_c]
        + [resident_spec(w.shape) for w in w0_parts]
        + [resident_spec((1, w0.shape[1]))]
        + [resident_spec(a.shape) for a in layer_ops]
    )
    out_specs = pl.BlockSpec((tb, out_dim), lambda i: (i, 0))

    # Advisory cost estimate for the XLA scheduler.
    dims = [w0.shape[1]] + [linears[li][0].shape[1] for li in range(1, n_layers)]
    flops = 2 * padded_b * sum(d * dims[0] for d in part_dims)
    for li in range(1, n_layers):
        flops += 2 * padded_b * dims[li - 1] * dims[li]
    bytes_accessed = sum(int(x.size) * x.dtype.itemsize for x in inputs) \
        + padded_b * out_dim * jnp.dtype(out_dtype).itemsize

    kernel = functools.partial(_mlp_kernel, n_parts=n_parts,
                               n_layers=n_layers, final_vpu=final_vpu)

    out = pl.pallas_call(
        kernel,
        out_shape=jax.ShapeDtypeStruct((padded_b, out_dim), out_dtype),
        grid=(padded_b // tb,),
        in_specs=in_specs,
        out_specs=out_specs,
        compiler_params=pltpu.CompilerParams(
            dimension_semantics=("parallel",)),
        cost_estimate=pl.CostEstimate(flops=flops, transcendentals=0,
                                      bytes_accessed=bytes_accessed),
    )(*inputs)
    return out[:B]


# ----------------------------------------------------------------------------
# Parameter initialization (deterministic, mimics PyTorch defaults)
# ----------------------------------------------------------------------------
def init_params(key, cellline_feats, in_feats, emd_feats, layer_list,
                concat_feats=0):
    keys = jax.random.split(key, 1 + 2 * len(layer_list))
    params = {}
    # nn.Embedding default init: N(0, 1)
    params["embedding"] = jax.random.normal(
        keys[0], (cellline_feats, emd_feats), dtype=jnp.float32)

    dims = [in_feats * 2 + emd_feats + concat_feats] + list(layer_list)
    linears = []
    for i in range(len(layer_list)):
        fan_in, fan_out = dims[i], dims[i + 1]
        bound = 1.0 / (fan_in ** 0.5)
        w = jax.random.uniform(keys[1 + 2 * i], (fan_in, fan_out),
                               minval=-bound, maxval=bound, dtype=jnp.float32)
        b = jax.random.uniform(keys[2 + 2 * i], (1, fan_out),
                               minval=-bound, maxval=bound, dtype=jnp.float32)
        linears.append((w, b))
    params["linears"] = linears
    return params


# ----------------------------------------------------------------------------
# Full forward pass (embedding gather is glue; concat is fused into the kernel)
# ----------------------------------------------------------------------------
def te_predictor_forward(params, drug_embedding1, drug_embedding2, cellline_idx,
                         se_output=None, block_batch=256):
    cell_emb = jnp.take(params["embedding"], cellline_idx, axis=0)
    parts = [drug_embedding1, drug_embedding2, cell_emb]
    if se_output is not None:
        parts.append(se_output)
    return te_predictor_mlp(parts, params["linears"], block_batch=block_batch)


# Pure-JAX reference mirroring the kernel's mixed-precision strategy
# (bf16 operands, f32 accumulation, f32 bias/ReLU).
def te_predictor_forward_ref(params, d1, d2, idx, se_output=None):
    cell_emb = jnp.take(params["embedding"], idx, axis=0)
    parts = [d1, d2, cell_emb] + ([se_output] if se_output is not None else [])
    h = jnp.concatenate(parts, axis=1).astype(jnp.bfloat16)
    linears = params["linears"]
    for li, (w, b) in enumerate(linears):
        last = li == len(linears) - 1
        if last and w.shape[1] == 1 and len(linears) >= 2:
            w_row = w.astype(jnp.bfloat16).astype(jnp.float32).T      # (1, K)
            h = jnp.sum(h.astype(jnp.float32) * w_row, axis=-1,
                        keepdims=True) + b
        else:
            h = jnp.dot(h, w.astype(jnp.bfloat16),
                        preferred_element_type=jnp.float32) + b
            if not last:
                h = jnp.maximum(h, 0.0).astype(jnp.bfloat16)
    return h


if __name__ == "__main__":
    # Small, module-consistent shapes; batch chosen to exercise the grid
    # (block_batch=16 -> 3 grid steps) and batch padding (40 -> 48).
    batch = 40
    cellline_feats = 10   # embedding vocab size
    in_feats = 32         # per-drug embedding size
    emd_feats = 16        # cell-line embedding size
    layer_list = [64, 32, 1]

    key = jax.random.PRNGKey(0)
    pkey, k1, k2, k3 = jax.random.split(key, 4)

    params = init_params(pkey, cellline_feats, in_feats, emd_feats, layer_list)

    drug_embedding1 = jax.random.normal(k1, (batch, in_feats), dtype=jnp.float32)
    drug_embedding2 = jax.random.normal(k2, (batch, in_feats), dtype=jnp.float32)
    cellline_idx = jax.random.randint(k3, (batch,), 0, cellline_feats)

    out = te_predictor_forward(params, drug_embedding1, drug_embedding2,
                               cellline_idx, block_batch=16)
    out = jax.block_until_ready(out)

    ref = te_predictor_forward_ref(params, drug_embedding1, drug_embedding2,
                                   cellline_idx)
    assert out.shape == (batch, layer_list[-1])
    assert out.dtype == jnp.float32
    assert jnp.allclose(out, ref, atol=1e-3, rtol=1e-3), (
        float(jnp.max(jnp.abs(out - ref))))

    print("KERNEL_OK")
</pallas_src>

<mosaic_0001>
module attributes {stable_mosaic.version = 11 : i64} {
  func.func @_mlp_kernel(%arg0: i32, %arg1: memref<16x32xbf16, #tpu.memory_space<vmem>>, %arg2: memref<16x32xbf16, #tpu.memory_space<vmem>>, %arg3: memref<16x16xbf16, #tpu.memory_space<vmem>>, %arg4: memref<32x64xbf16, #tpu.memory_space<vmem>>, %arg5: memref<32x64xbf16, #tpu.memory_space<vmem>>, %arg6: memref<16x64xbf16, #tpu.memory_space<vmem>>, %arg7: memref<1x64xf32, #tpu.memory_space<vmem>>, %arg8: memref<64x32xbf16, #tpu.memory_space<vmem>>, %arg9: memref<1x32xf32, #tpu.memory_space<vmem>>, %arg10: memref<1x32xbf16, #tpu.memory_space<vmem>>, %arg11: memref<1x1xf32, #tpu.memory_space<vmem>>, %arg12: memref<16x1xf32, #tpu.memory_space<vmem>>) attributes {dimension_semantics = [#tpu.dimension_semantics<parallel>], iteration_bounds = array<i64: 3>, scalar_prefetch = 0 : i64, scratch_operands = 0 : i64, tpu.core_type = #tpu.core_type<tc>, window_params = [{transform_indices = @transform_0, window_bounds = array<i64: 16, 32>}, {transform_indices = @transform_1, window_bounds = array<i64: 16, 32>}, {transform_indices = @transform_2, window_bounds = array<i64: 16, 16>}, {pipeline_mode = #tpu.pipeline_mode<synchronous>, transform_indices = @transform_3, window_bounds = array<i64: 32, 64>}, {pipeline_mode = #tpu.pipeline_mode<synchronous>, transform_indices = @transform_4, window_bounds = array<i64: 32, 64>}, {pipeline_mode = #tpu.pipeline_mode<synchronous>, transform_indices = @transform_5, window_bounds = array<i64: 16, 64>}, {pipeline_mode = #tpu.pipeline_mode<synchronous>, transform_indices = @transform_6, window_bounds = array<i64: 1, 64>}, {pipeline_mode = #tpu.pipeline_mode<synchronous>, transform_indices = @transform_7, window_bounds = array<i64: 64, 32>}, {pipeline_mode = #tpu.pipeline_mode<synchronous>, transform_indices = @transform_8, window_bounds = array<i64: 1, 32>}, {pipeline_mode = #tpu.pipeline_mode<synchronous>, transform_indices = @transform_9, window_bounds = array<i64: 1, 32>}, {pipeline_mode = #tpu.pipeline_mode<synchronous>, transform_indices = @transform_10, window_bounds = array<i64: 1, 1>}, {transform_indices = @transform_11, window_bounds = array<i64: 16, 1>}]} {
    %c0 = arith.constant 0 : index
    %c0_0 = arith.constant 0 : index
    %0 = vector.load %arg1[%c0, %c0_0] : memref<16x32xbf16, #tpu.memory_space<vmem>>, vector<16x32xbf16>
    %c0_1 = arith.constant 0 : index
    %c0_2 = arith.constant 0 : index
    %1 = vector.load %arg4[%c0_1, %c0_2] : memref<32x64xbf16, #tpu.memory_space<vmem>>, vector<32x64xbf16>
    %cst = arith.constant dense<0.000000e+00> : vector<16x64xf32>
    %2 = tpu.matmul %0, %1, %cst {dimension_numbers = #tpu.dot_dimension_numbers<[1], [0], [0], [1], [0, 0, 1, 1], [], []>} : vector<16x32xbf16>, vector<32x64xbf16>, vector<16x64xf32> -> vector<16x64xf32>
    %c0_3 = arith.constant 0 : index
    %c0_4 = arith.constant 0 : index
    %3 = vector.load %arg2[%c0_3, %c0_4] : memref<16x32xbf16, #tpu.memory_space<vmem>>, vector<16x32xbf16>
    %c0_5 = arith.constant 0 : index
    %c0_6 = arith.constant 0 : index
    %4 = vector.load %arg5[%c0_5, %c0_6] : memref<32x64xbf16, #tpu.memory_space<vmem>>, vector<32x64xbf16>
    %cst_7 = arith.constant dense<0.000000e+00> : vector<16x64xf32>
    %5 = tpu.matmul %3, %4, %cst_7 {dimension_numbers = #tpu.dot_dimension_numbers<[1], [0], [0], [1], [0, 0, 1, 1], [], []>} : vector<16x32xbf16>, vector<32x64xbf16>, vector<16x64xf32> -> vector<16x64xf32>
    %6 = arith.addf %2, %5 : vector<16x64xf32>
    %c0_8 = arith.constant 0 : index
    %c0_9 = arith.constant 0 : index
    %7 = vector.load %arg3[%c0_8, %c0_9] : memref<16x16xbf16, #tpu.memory_space<vmem>>, vector<16x16xbf16>
    %c0_10 = arith.constant 0 : index
    %c0_11 = arith.constant 0 : index
    %8 = vector.load %arg6[%c0_10, %c0_11] : memref<16x64xbf16, #tpu.memory_space<vmem>>, vector<16x64xbf16>
    %cst_12 = arith.constant dense<0.000000e+00> : vector<16x64xf32>
    %9 = tpu.matmul %7, %8, %cst_12 {dimension_numbers = #tpu.dot_dimension_numbers<[1], [0], [0], [1], [0, 0, 1, 1], [], []>} : vector<16x16xbf16>, vector<16x64xbf16>, vector<16x64xf32> -> vector<16x64xf32>
    %10 = arith.addf %6, %9 : vector<16x64xf32>
    %c0_13 = arith.constant 0 : index
    %c0_14 = arith.constant 0 : index
    %11 = vector.load %arg7[%c0_13, %c0_14] : memref<1x64xf32, #tpu.memory_space<vmem>>, vector<1x64xf32>
    %12 = vector.broadcast %11 : vector<1x64xf32> to vector<16x64xf32>
    %13 = arith.addf %10, %12 : vector<16x64xf32>
    %cst_15 = arith.constant 0.000000e+00 : f32
    %14 = vector.broadcast %cst_15 : f32 to vector<16x64xf32>
    %15 = arith.maximumf %13, %14 : vector<16x64xf32>
    %16 = arith.truncf %15 : vector<16x64xf32> to vector<16x64xbf16>
    %c0_16 = arith.constant 0 : index
    %c0_17 = arith.constant 0 : index
    %17 = vector.load %arg8[%c0_16, %c0_17] : memref<64x32xbf16, #tpu.memory_space<vmem>>, vector<64x32xbf16>
    %cst_18 = arith.constant dense<0.000000e+00> : vector<16x32xf32>
    %18 = tpu.matmul %16, %17, %cst_18 {dimension_numbers = #tpu.dot_dimension_numbers<[1], [0], [0], [1], [0, 0, 1, 1], [], []>} : vector<16x64xbf16>, vector<64x32xbf16>, vector<16x32xf32> -> vector<16x32xf32>
    %c0_19 = arith.constant 0 : index
    %c0_20 = arith.constant 0 : index
    %19 = vector.load %arg9[%c0_19, %c0_20] : memref<1x32xf32, #tpu.memory_space<vmem>>, vector<1x32xf32>
    %20 = vector.broadcast %19 : vector<1x32xf32> to vector<16x32xf32>
    %21 = arith.addf %18, %20 : vector<16x32xf32>
    %cst_21 = arith.constant 0.000000e+00 : f32
    %22 = vector.broadcast %cst_21 : f32 to vector<16x32xf32>
    %23 = arith.maximumf %21, %22 : vector<16x32xf32>
    %c0_22 = arith.constant 0 : index
    %c0_23 = arith.constant 0 : index
    %24 = vector.load %arg10[%c0_22, %c0_23] : memref<1x32xbf16, #tpu.memory_space<vmem>>, vector<1x32xbf16>
    %25 = arith.extf %24 : vector<1x32xbf16> to vector<1x32xf32>
    %26 = vector.broadcast %25 : vector<1x32xf32> to vector<16x32xf32>
    %27 = arith.mulf %23, %26 : vector<16x32xf32>
    %cst_24 = arith.constant dense<0.000000e+00> : vector<16xf32>
    %28 = vector.multi_reduction <add>, %27, %cst_24 [1] : vector<16x32xf32> to vector<16xf32>
    %29 = vector.shape_cast %28 : vector<16xf32> to vector<16x1xf32>
    %c0_25 = arith.constant 0 : index
    %c0_26 = arith.constant 0 : index
    %30 = vector.load %arg11[%c0_25, %c0_26] : memref<1x1xf32, #tpu.memory_space<vmem>>, vector<1x1xf32>
    %31 = vector.broadcast %30 : vector<1x1xf32> to vector<16x1xf32>
    %32 = arith.addf %29, %31 : vector<16x1xf32>
    %c0_27 = arith.constant 0 : index
    %c0_28 = arith.constant 0 : index
    %33 = vector.load %arg12[%c0_27, %c0_28] : memref<16x1xf32, #tpu.memory_space<vmem>>, vector<16x1xf32>
    tpu.vector_store %arg12[%c0_27, %c0_28], %32 {strides = array<i32>} : memref<16x1xf32, #tpu.memory_space<vmem>>, vector<16x1xf32>,
    return
  }
  func.func @transform_0(%arg0: i32) -> (i32, i32) {
    %c0_i32 = arith.constant 0 : i32
    %c0_i32_0 = arith.constant 0 : i32
    return %arg0, %c0_i32 : i32, i32
  }
  func.func @transform_1(%arg0: i32) -> (i32, i32) {
    %c0_i32 = arith.constant 0 : i32
    %c0_i32_0 = arith.constant 0 : i32
    return %arg0, %c0_i32 : i32, i32
  }
  func.func @transform_2(%arg0: i32) -> (i32, i32) {
    %c0_i32 = arith.constant 0 : i32
    %c0_i32_0 = arith.constant 0 : i32
    return %arg0, %c0_i32 : i32, i32
  }
  func.func @transform_3(%arg0: i32) -> (i32, i32) {
    %c0_i32 = arith.constant 0 : i32
    %c0_i32_0 = arith.constant 0 : i32
    %c0_i32_1 = arith.constant 0 : i32
    return %c0_i32, %c0_i32_0 : i32, i32
  }
  func.func @transform_4(%arg0: i32) -> (i32, i32) {
    %c0_i32 = arith.constant 0 : i32
    %c0_i32_0 = arith.constant 0 : i32
    %c0_i32_1 = arith.constant 0 : i32
    return %c0_i32, %c0_i32_0 : i32, i32
  }
  func.func @transform_5(%arg0: i32) -> (i32, i32) {
    %c0_i32 = arith.constant 0 : i32
    %c0_i32_0 = arith.constant 0 : i32
    %c0_i32_1 = arith.constant 0 : i32
    return %c0_i32, %c0_i32_0 : i32, i32
  }
  func.func @transform_6(%arg0: i32) -> (i32, i32) {
    %c0_i32 = arith.constant 0 : i32
    %c0_i32_0 = arith.constant 0 : i32
    %c0_i32_1 = arith.constant 0 : i32
    return %c0_i32, %c0_i32_0 : i32, i32
  }
  func.func @transform_7(%arg0: i32) -> (i32, i32) {
    %c0_i32 = arith.constant 0 : i32
    %c0_i32_0 = arith.constant 0 : i32
    %c0_i32_1 = arith.constant 0 : i32
    return %c0_i32, %c0_i32_0 : i32, i32
  }
  func.func @transform_8(%arg0: i32) -> (i32, i32) {
    %c0_i32 = arith.constant 0 : i32
    %c0_i32_0 = arith.constant 0 : i32
    %c0_i32_1 = arith.constant 0 : i32
    return %c0_i32, %c0_i32_0 : i32, i32
  }
  func.func @transform_9(%arg0: i32) -> (i32, i32) {
    %c0_i32 = arith.constant 0 : i32
    %c0_i32_0 = arith.constant 0 : i32
    %c0_i32_1 = arith.constant 0 : i32
    return %c0_i32, %c0_i32_0 : i32, i32
  }
  func.func @transform_10(%arg0: i32) -> (i32, i32) {
    %c0_i32 = arith.constant 0 : i32
    %c0_i32_0 = arith.constant 0 : i32
    %c0_i32_1 = arith.constant 0 : i32
    return %c0_i32, %c0_i32_0 : i32, i32
  }
  func.func @transform_11(%arg0: i32) -> (i32, i32) {
    %c0_i32 = arith.constant 0 : i32
    %c0_i32_0 = arith.constant 0 : i32
    return %arg0, %c0_i32 : i32, i32
  }
}

</mosaic_0001>

<bundles_post_ra>
// kernel: tpu_custom_call.1
= control target key start
LH: loop header
LB: loop body
LE: loop exit
PB: predicated region body
PF: predicated region fallthrough
CT: control target
= control target key end

     0   :  { %s1014_s19 = smov 0   ;;  %s1085_s0 = inlined_call_operand.vmem [shape: bf16[48,32], index: 0, kind: input, shape index: {}]   ;;  %s1086_s1 = inlined_call_operand.vmem [shape: bf16[48,32], index: 1, kind: input, shape index: {}]   ;;  %s1087_s2 = inlined_call_operand.vmem [shape: bf16[48,16], index: 2, kind: input, shape index: {}]   ;;  %s1088_s3 = inlined_call_operand.vmem [shape: bf16[32,64], index: 3, kind: input, shape index: {}]   ;;  %s1089_s4 = inlined_call_operand.vmem [shape: bf16[32,64], index: 4, kind: input, shape index: {}]   ;;  %s1090_s5 = inlined_call_operand.vmem [shape: bf16[16,64], index: 5, kind: input, shape index: {}]   ;;  %s1091_s6 = inlined_call_operand.vmem [shape: f32[1,64], index: 6, kind: input, shape index: {}]   ;;  %s1092_s7 = inlined_call_operand.vmem [shape: bf16[64,32], index: 7, kind: input, shape index: {}]   ;;  %s1093_s8 = inlined_call_operand.vmem [shape: f32[1,32], index: 8, kind: input, shape index: {}]   ;;  %s1094_s9 = inlined_call_operand.vmem [shape: bf16[1,32], index: 9, kind: input, shape index: {}]   ;;  %s1095_s10 = inlined_call_operand.<no memory space> [shape: f32[1,1], index: 10, kind: input, shape index: {}]   ;;  %s1096_s11 = inlined_call_operand.vmem [shape: f32[48,1], index: 11, kind: output, shape index: {}]  }
   0x1   :  { %v16_v0 = vstv %s1095_s10 }
   0x2   :  { %17 = vst [vmem:[#allocation2] sm:$0x1] %v16_v0 }
   0x3 LB: > { %s838_s20 = sadd.s32 4294967295, %s947_s19   ;;  %p842_p0 = scmp.ge.s32.totalorder %s947_s19, 1  ;;  %s947_s19 = sphi %s1014_s19, %s23_s19  }
   0x4   : > { %p362_p1 = scmp.lt.s32.totalorder %s947_s19, 4 }
   0x6   : > { %p363_p2 = pnand %p842_p0, %p362_p1 }
   0x7   : > { %v929_v1 = vld [vmem:[%s1089_s4] sm:$0xff] (!%p363_p2)   ;;  %v949_v2 = vmov (!%p363_p2), 0.0   ;;  %v931_v4 = vld [vmem:[%s1089_s4 + $0x8] sm:$0xff] (!%p363_p2)   ;;  %vm950_vm0 = vmmov (!%p363_p2), 0   ;;  %s843_s26 = sshll.u32 (!%p363_p2), %s838_s20, 1  ;;  %vm466_vm1 = vcmask (!%p363_p2), 261120   ;;  %v734_v36 = vlaneseq (!%p363_p2) }
   0x8   : > { %366 = sbr.rel (%p363_p2) target bundleno = 617 (0x269), region = 64  ;;  %885 = vmatprep.subr.bf16.mxu0 (!%p363_p2), %v949_v2  ;;  %893 = vmatprep.subr.bf16.mxu1 (!%p363_p2), %v949_v2  ;;  %v930_v3 = vld [vmem:[%s1088_s3] sm:$0xff] (!%p363_p2)   ;;  %v932_v5 = vld [vmem:[%s1088_s3 + $0x8] sm:$0xff] (!%p363_p2)   ;;  %p413_p3 = scmp.lt.s32.totalorder (!%p363_p2), %s843_s26, 5  ;;  %vm587_vm2 = vcmask (!%p363_p2), 130048   ;;  %v939_v12 = vld [vmem:[%s1092_s7 + $0x10] sm:$0xff] (!%p363_p2)  }
   0x9   : > { %886 = vmatpush3.bf16.msra.mxu0 (!%p363_p2), %v929_v1  ;;  %889 = vmatprep.mubr.msk.bf16.mxu0 (!%p363_p2), %vm950_vm0, %v949_v2  ;;  %v935_v6 = vld [vmem:[%s1090_s5] sm:$0xff] (!%p363_p2)   ;;  %v938_v11 = vld [vmem:[%s1092_s7 + $0x8] sm:$0xff] (!%p363_p2)   ;;  %v940_v13 = vld [vmem:[%s1092_s7 + $0x18] sm:$0xff] (!%p363_p2)   ;;  %vm685_vm3 = vcmask (!%p363_p2), 523264   ;;  %v735_v37 = vshrl.u32 (!%p363_p2), %v734_v36, 7  ;;  %vm755_vm4 = vcmask (!%p363_p2), 7168  }
   0xa   : > { %894 = vmatpush3.bf16.msra.mxu1 (!%p363_p2), %v930_v3  ;;  %887 = vmatprep.subr.bf16.mxu0 (!%p363_p2), %v949_v2  ;;  %v937_v10 = vld [vmem:[%s1092_s7] sm:$0xff] (!%p363_p2)  }
   0xb   : > { %895 = vmatprep.subr.bf16.mxu1 (!%p363_p2), %v949_v2  ;;  %897 = vmatprep.mubr.msk.bf16.mxu1 (!%p363_p2), %vm950_vm0, %v949_v2  ;;  %v862_v25 = vld [vmem:[%s1091_s6] ss:$0 sm:$0xff] (!%p363_p2)  ;;  %v736_v40 = vsub.s32 (!%p363_p2), 0, %v735_v37 }
   0xc   : > { %v732_v38 = vld [vmem:[%s1094_s9] sm:$0x1] (!%p363_p2) }
   0xd   : > { %888 = vmatpush3.bf16.msra.mxu0 (!%p363_p2), %v931_v4  ;;  %v733_v39 = vunpack.c.l.bf16 (!%p363_p2), %v732_v38  ;;  %v863_v41 = vld [vmem:[%s1093_s8] ss:$0 sm:$0xff] (!%p363_p2) }
   0xe   : > { %896 = vmatpush3.bf16.msra.mxu1 (!%p363_p2), %v932_v5  ;;  %901 = vmatprep.subr.bf16.mxu0 (!%p363_p2), %v949_v2  ;;  %v869_v55 = vld [vmem:[#allocation2] ss:$0 sm:$0xff] (!%p363_p2) }
   0xf   : > { %s1098_s26 = smov (!%p413_p3, %s843_s26), 5  ;;  %907 = vmatprep.subr.bf16.mxu1 %v949_v2  ;;  %v737_v45 = vrot.slane %v733_v39, %v736_v40 }
  0x10   : > { %s844_s29 = sshll.u32 %s1098_s26, 2  ;;  %s850_s18 = sshll.u32 %s1098_s26, 3 }
  0x11   : > { %s422_s13 = scalar_lea.vmem %s1086_s1, %s844_s29  ;;  %s416_s16 = scalar_lea.vmem %s1085_s0, %s844_s29 }
  0x12   : > { %v933_v7 = vld [vmem:[%s422_s13] sm:$0xff]   ;;  %s428_s22 = scalar_lea.vmem %s1087_s2, %s844_s29 }
  0x13   : > { %v934_v8 = vld [vmem:[%s416_s16] sm:$0xff]   ;;  %890 = vmatmul.mubr.msk.bf16.vlgmr.msra.gmra.mrb[0].mxu0 %vm466_vm1, %v933_v7 }
  0x14   : > { %898 = vmatmul.mubr.msk.bf16.vlgmr.msra.gmra.mrb[0].mxu1 %vm466_vm1, %v934_v8  ;;  %902 = vmatpush3.bf16.msra.mxu0 %v935_v6  ;;  %v936_v9 = vld [vmem:[%s428_s22] sm:$0xff]   ;;  %s434_s22 = scalar_lea.vmem %s1096_s11, %s850_s18 }
  0x15   : > { %903 = vmatprep.mubr.msk.bf16.mxu0 %vm950_vm0, %v949_v2  ;;  %915 = vmatprep.mubr.msk.bf16.mxu1 %vm950_vm0, %v949_v2 }
  0x16   : > { %908 = vmatpush3.bf16.msra.mxu1 %v937_v10 }
  0x17   : > { %909 = vmatprep.subr.bf16.mxu1 %v949_v2 }
  0x1a   : > { %910 = vmatpush3.bf16.msra.mxu1 %v938_v11 }
  0x1b   : > { %904 = vmatmul.mubr.msk.bf16.vlgmr.msra.gmra.mrb[4].mxu0 %vm587_vm2, %v936_v9  ;;  %911 = vmatprep.subr.bf16.mxu1 %v949_v2 }
  0x1e   : > { %912 = vmatpush3.bf16.msra.mxu1 %v939_v12 }
  0x1f   : > { %913 = vmatprep.subr.bf16.mxu1 %v949_v2 }
  0x22   : > { %914 = vmatpush3.bf16.msra.mxu1 %v940_v13 }
  0xe6   : > { %v504_v14 = vpop.f32.mrb[0].mxu0 }
  0xe7   : > { %v565_v15 = vpop.f32.mrb[0].mxu1  ;;  %v891_v16 = vpop.f32.mrb[1].mxu0 }
  0xe8   : > { %v566_v17 = vadd.f32 %v565_v15, %v504_v14  ;;  %v899_v18 = vpop.f32.mrb[1].mxu1  ;;  %v507_v19 = vpop.f32.mrb[2].mxu0 }
  0xe9   : > { %v568_v20 = vpop.f32.mrb[2].mxu1  ;;  %v892_v21 = vpop.f32.mrb[3].mxu0 }
  0xea   : > { %v569_v22 = vadd.f32 %v568_v20, %v507_v19  ;;  %v900_v23 = vpop.f32.mrb[3].mxu1 }
  0xee   : > { %v625_v24 = vpop.f32.mrb[4].mxu0 }
  0xef   : > { %v632_v26 = vadd.f32 %v625_v24, %v566_v17  ;;  %v905_v27 = vpop.f32.mrb[5].mxu0 }
  0xf0   : > { %v628_v28 = vpop.f32.mrb[6].mxu0 }
  0xf1   : > { %v641_v29 = vadd.f32 %v862_v25, %v632_v26  ;;  %v633_v30 = vadd.f32 %v628_v28, %v569_v22  ;;  %v906_v31 = vpop.f32.mrb[7].mxu0 }
  0xf3   : > { %v642_v32 = vadd.f32 %v862_v25, %v633_v30  ;;  %v643_v33 = vmax.f32 %v641_v29, 0.0 }
  0xf5   : > { %v644_v34 = vmax.f32 %v642_v32, 0.0 }
  0xf7   : > { %v645_v35 = vpack.c.bf16 %v644_v34, %v643_v33 }
  0xf9   : > { %916 = vmatmul.mubr.msk.bf16.vlgmr.msra.gmra.mrb[4].mxu1 %vm685_vm3, %v645_v35 }
 0x1cc   : > { %v723_v42 = vpop.f32.mrb[4].mxu1 }
 0x1cd   : > { %v724_v43 = vadd.f32 %v863_v41, %v723_v42  ;;  %v917_v44 = vpop.f32.mrb[5].mxu1 }
 0x1ce   : > { %v726_v46 = vpop.f32.mrb[6].mxu1 }
 0x1cf   : > { %v730_v47 = vmax.f32 %v724_v43, 0.0  ;;  %v727_v48 = vadd.f32 %v863_v41, %v726_v46  ;;  %v918_v49 = vpop.f32.mrb[7].mxu1 }
 0x1d1   : > { %v731_v50 = vmax.f32 %v727_v48, 0.0  ;;  %v738_v51 = vmul.f32 %v737_v45, %v730_v47 }
 0x1d3   : > { %v740_v52 = vsel %vm466_vm1, %v738_v51, 0.0  ;;  %v739_v53 = vmul.f32 %v737_v45, %v731_v50 }
 0x1d4   : > { %741 = vadd.xlane.f32.xlu0 %v740_v52 }
 0x1d5   : > { %v743_v54 = vsel %vm466_vm1, %v739_v53, 0.0 }
 0x1d8   : > { %744 = vadd.xlane.f32.xlu0 %v743_v54 }
 0x261   : > { %v742_v56 = vpop.xlane.xlu0 %741 }
 0x262   : > { %v753_v57 = vadd.f32 %v869_v55, %v742_v56 }
 0x264   : > { %756 = vst.msk [vmem:[%s434_s22] sm:$0xff] %vm755_vm4, %v753_v57 }
 0x265   : > { %v745_v58 = vpop.xlane.xlu0 %744 }
 0x266   : > { %v754_v59 = vadd.f32 %v869_v55, %v745_v58 }
 0x268   : > { %757 = vst.msk [vmem:[%s434_s22 + $0x8] sm:$0xff] %vm755_vm4, %v754_v59 }
 0x269 PF: > { %s23_s19 = sadd.s32 1, %s947_s19  }
 0x26a   : > { %p20_p4 = scmp.ge.s32.totalorder %s23_s19, 5  }
 0x26c   :  { %22 = sbr.rel (!%p20_p4) target bundleno = 3 (0x3), region = 100 }

</bundles_post_ra>
